<compile_context>
chip_gen: v6e
topology: v6e:2x2x1
jax: 0.10.0
libtpu: 0.0.40
codegen_flags: <defaults>
</compile_context>

<pallas_src>
import functools

import numpy as np
import jax
import jax.numpy as jnp
from jax import lax
from jax.experimental import pallas as pl
from jax.experimental.pallas import tpu as pltpu


# ------------------------------------------------------------------ fused MHSA kernel

def _mhsa_kernel(x_ref, wqkv_ref, wo_ref, bo_ref, o_ref, *,
                 nheads, dim_head, scale, use_bf16_mxu):
    """One batch element: x (1, n, dim) -> out (1, n, dim), fully VMEM-resident."""
    dimD = nheads * dim_head
    x = x_ref[0]                                     # (n, dim) f32

    def mxu(a, b):
        # Cast only at the MXU boundary; accumulate in f32.
        if use_bf16_mxu:
            a = a.astype(jnp.bfloat16)
            b = b.astype(jnp.bfloat16)
        return jnp.dot(a, b, preferred_element_type=jnp.float32)

    def mxu_qk(a, b):
        # Contract the last axes of q and k directly (no explicit transpose).
        if use_bf16_mxu:
            a = a.astype(jnp.bfloat16)
            b = b.astype(jnp.bfloat16)
        return lax.dot_general(a, b, (((1,), (1,)), ((), ())),
                               preferred_element_type=jnp.float32)

    # Fused QKV projection: (n, dim) @ (dim, 3*dimD) -> (n, 3*dimD)
    qkv = mxu(x, wqkv_ref[...])
    q = qkv[:, :dimD] * scale                        # scale in f32 on the VPU
    k = qkv[:, dimD:2 * dimD]
    v = qkv[:, 2 * dimD:]

    # Per-head attention with static lane slices (nheads small & static).
    ctx_parts = []
    for h in range(nheads):
        sl = slice(h * dim_head, (h + 1) * dim_head)
        qh, kh, vh = q[:, sl], k[:, sl], v[:, sl]

        s = mxu_qk(qh, kh)                           # (n, n) scores, f32
        s = s - jnp.max(s, axis=-1, keepdims=True)   # numerically stable softmax
        e = jnp.exp(s)                               # EUP
        p = e / jnp.sum(e, axis=-1, keepdims=True)
        # TODO(synk): nn.Dropout on attention weights treated as eval-mode identity.
        ctx_parts.append(mxu(p, vh))                 # (n, dim_head)

    ctx = jnp.concatenate(ctx_parts, axis=-1)        # (n, dimD), heads packed in lanes

    # Output projection + bias (output dropout = eval-mode identity).
    o_ref[0] = mxu(ctx, wo_ref[...]) + bo_ref[...]


def mhsa_forward(x, wq, wk, wv, wo, bo, *, nheads, dim_head, use_bf16_mxu=False):
    """x: (bs, n, dim).  Weights in (in, out) layout: wq/wk/wv (dim, dimD), wo (dimD, dim)."""
    bs, n, dim = x.shape
    dimD = nheads * dim_head
    # Fuse the three projection weights once, outside the kernel.
    wqkv = jnp.concatenate([wq, wk, wv], axis=1)     # (dim, 3*dimD)

    kernel = functools.partial(
        _mhsa_kernel,
        nheads=nheads, dim_head=dim_head,
        scale=float(dim_head) ** -0.5,
        use_bf16_mxu=use_bf16_mxu,
    )

    return pl.pallas_call(
        kernel,
        out_shape=jax.ShapeDtypeStruct((bs, n, dim), jnp.float32),
        grid=(bs,),
        in_specs=[
            pl.BlockSpec((1, n, dim), lambda b: (b, 0, 0)),     # per-batch activation tile
            pl.BlockSpec((dim, 3 * dimD), lambda b: (0, 0)),    # fused QKV weight (resident)
            pl.BlockSpec((dimD, dim), lambda b: (0, 0)),        # output proj weight (resident)
            pl.BlockSpec((1, dim), lambda b: (0, 0)),           # output proj bias (resident)
        ],
        out_specs=pl.BlockSpec((1, n, dim), lambda b: (b, 0, 0)),
        compiler_params=pltpu.CompilerParams(
            dimension_semantics=("parallel",),                  # batch axis -> both TCs on v7x
        ),
    )(x, wqkv, wo, bo.reshape(1, dim))


# ------------------------------------------------------------------ pure-JAX reference

def mhsa_reference(x, wq, wk, wv, wo, bo, *, nheads, dim_head):
    bs, n, dim = x.shape
    dimD = nheads * dim_head

    def split(y):
        return y.reshape(bs, n, nheads, dim_head).transpose(0, 2, 1, 3)

    q = split(x @ wq) * (float(dim_head) ** -0.5)
    k = split(x @ wk)
    v = split(x @ wv)
    s = jnp.einsum('bhqd,bhkd->bhqk', q, k)
    p = jax.nn.softmax(s, axis=-1)
    ctx = jnp.einsum('bhqk,bhkd->bhqd', p, v)
    ctx = ctx.transpose(0, 2, 1, 3).reshape(bs, n, dimD)
    return ctx @ wo + bo


# ------------------------------------------------------------------ demo / self-test

if __name__ == "__main__":
    BS, N, DIM = 2, 8, 32          # (batch, seq, hidden)
    NHEADS, DIM_HEAD = 4, 8
    DIMD = NHEADS * DIM_HEAD

    root = jax.random.PRNGKey(0)
    kx, kq, kk, kv, ko, kb = jax.random.split(root, 6)

    x = jax.random.normal(kx, (BS, N, DIM), jnp.float32)
    wq = 0.05 * jax.random.normal(kq, (DIM, DIMD), jnp.float32)
    wk = 0.05 * jax.random.normal(kk, (DIM, DIMD), jnp.float32)
    wv = 0.05 * jax.random.normal(kv, (DIM, DIMD), jnp.float32)
    wo = 0.05 * jax.random.normal(ko, (DIMD, DIM), jnp.float32)
    bo = 0.01 * jax.random.normal(kb, (DIM,), jnp.float32)

    out = mhsa_forward(x, wq, wk, wv, wo, bo,
                       nheads=NHEADS, dim_head=DIM_HEAD, use_bf16_mxu=False)
    out = jax.block_until_ready(out)

    ref = jax.block_until_ready(
        mhsa_reference(x, wq, wk, wv, wo, bo, nheads=NHEADS, dim_head=DIM_HEAD))

    assert out.shape == (BS, N, DIM)
    assert np.allclose(np.asarray(out), np.asarray(ref), atol=1e-4, rtol=1e-4), \
        f"max abs err {np.max(np.abs(np.asarray(out) - np.asarray(ref)))}"

    print("KERNEL_OK")
</pallas_src>

<mosaic_0001>
module attributes {stable_mosaic.version = 11 : i64} {
  func.func @_mhsa_kernel(%arg0: i32, %arg1: memref<1x8x32xf32, #tpu.memory_space<vmem>>, %arg2: memref<32x96xf32, #tpu.memory_space<vmem>>, %arg3: memref<32x32xf32, #tpu.memory_space<vmem>>, %arg4: memref<1x32xf32, #tpu.memory_space<vmem>>, %arg5: memref<1x8x32xf32, #tpu.memory_space<vmem>>) attributes {dimension_semantics = [#tpu.dimension_semantics<parallel>], iteration_bounds = array<i64: 2>, scalar_prefetch = 0 : i64, scratch_operands = 0 : i64, tpu.core_type = #tpu.core_type<tc>, window_params = [{transform_indices = @transform_0, window_bounds = array<i64: 1, 8, 32>}, {pipeline_mode = #tpu.pipeline_mode<synchronous>, transform_indices = @transform_1, window_bounds = array<i64: 32, 96>}, {pipeline_mode = #tpu.pipeline_mode<synchronous>, transform_indices = @transform_2, window_bounds = array<i64: 32, 32>}, {pipeline_mode = #tpu.pipeline_mode<synchronous>, transform_indices = @transform_3, window_bounds = array<i64: 1, 32>}, {transform_indices = @transform_4, window_bounds = array<i64: 1, 8, 32>}]} {
    %c0 = arith.constant 0 : index
    %c0_0 = arith.constant 0 : index
    %c0_1 = arith.constant 0 : index
    %0 = vector.load %arg1[%c0, %c0_0, %c0_1] : memref<1x8x32xf32, #tpu.memory_space<vmem>>, vector<1x8x32xf32>
    %1 = vector.shape_cast %0 : vector<1x8x32xf32> to vector<8x32xf32>
    %c0_2 = arith.constant 0 : index
    %c0_3 = arith.constant 0 : index
    %2 = vector.load %arg2[%c0_2, %c0_3] : memref<32x96xf32, #tpu.memory_space<vmem>>, vector<32x96xf32>
    %cst = arith.constant dense<0.000000e+00> : vector<8x96xf32>
    %3 = tpu.matmul %1, %2, %cst {dimension_numbers = #tpu.dot_dimension_numbers<[1], [0], [0], [1], [0, 0, 1, 1], [], []>} : vector<8x32xf32>, vector<32x96xf32>, vector<8x96xf32> -> vector<8x96xf32>
    %4 = vector.extract_strided_slice %3 {offsets = [0, 0], sizes = [8, 32], strides = [1, 1]} : vector<8x96xf32> to vector<8x32xf32>
    %cst_4 = arith.constant 0.353553385 : f32
    %5 = vector.broadcast %cst_4 : f32 to vector<8x32xf32>
    %6 = arith.mulf %4, %5 : vector<8x32xf32>
    %7 = vector.extract_strided_slice %3 {offsets = [0, 32], sizes = [8, 32], strides = [1, 1]} : vector<8x96xf32> to vector<8x32xf32>
    %8 = vector.extract_strided_slice %3 {offsets = [0, 64], sizes = [8, 32], strides = [1, 1]} : vector<8x96xf32> to vector<8x32xf32>
    %9 = vector.extract_strided_slice %6 {offsets = [0, 0], sizes = [8, 8], strides = [1, 1]} : vector<8x32xf32> to vector<8x8xf32>
    %10 = vector.extract_strided_slice %7 {offsets = [0, 0], sizes = [8, 8], strides = [1, 1]} : vector<8x32xf32> to vector<8x8xf32>
    %11 = vector.extract_strided_slice %8 {offsets = [0, 0], sizes = [8, 8], strides = [1, 1]} : vector<8x32xf32> to vector<8x8xf32>
    %cst_5 = arith.constant dense<0.000000e+00> : vector<8x8xf32>
    %12 = tpu.matmul %9, %10, %cst_5 {dimension_numbers = #tpu.dot_dimension_numbers<[1], [1], [0], [0], [0, 0, 1, 0], [], []>} : vector<8x8xf32>, vector<8x8xf32>, vector<8x8xf32> -> vector<8x8xf32>
    %cst_6 = arith.constant dense<0xFF800000> : vector<8xf32>
    %13 = vector.multi_reduction <maximumf>, %12, %cst_6 [1] : vector<8x8xf32> to vector<8xf32>
    %14 = vector.shape_cast %13 : vector<8xf32> to vector<8x1xf32>
    %15 = vector.broadcast %14 : vector<8x1xf32> to vector<8x8xf32>
    %16 = arith.subf %12, %15 : vector<8x8xf32>
    %17 = math.exp %16 : vector<8x8xf32>
    %cst_7 = arith.constant dense<0.000000e+00> : vector<8xf32>
    %18 = vector.multi_reduction <add>, %17, %cst_7 [1] : vector<8x8xf32> to vector<8xf32>
    %19 = vector.shape_cast %18 : vector<8xf32> to vector<8x1xf32>
    %20 = vector.broadcast %19 : vector<8x1xf32> to vector<8x8xf32>
    %21 = arith.divf %17, %20 : vector<8x8xf32>
    %cst_8 = arith.constant dense<0.000000e+00> : vector<8x8xf32>
    %22 = tpu.matmul %21, %11, %cst_8 {dimension_numbers = #tpu.dot_dimension_numbers<[1], [0], [0], [1], [0, 0, 1, 1], [], []>} : vector<8x8xf32>, vector<8x8xf32>, vector<8x8xf32> -> vector<8x8xf32>
    %23 = vector.extract_strided_slice %6 {offsets = [0, 8], sizes = [8, 8], strides = [1, 1]} : vector<8x32xf32> to vector<8x8xf32>
    %24 = vector.extract_strided_slice %7 {offsets = [0, 8], sizes = [8, 8], strides = [1, 1]} : vector<8x32xf32> to vector<8x8xf32>
    %25 = vector.extract_strided_slice %8 {offsets = [0, 8], sizes = [8, 8], strides = [1, 1]} : vector<8x32xf32> to vector<8x8xf32>
    %cst_9 = arith.constant dense<0.000000e+00> : vector<8x8xf32>
    %26 = tpu.matmul %23, %24, %cst_9 {dimension_numbers = #tpu.dot_dimension_numbers<[1], [1], [0], [0], [0, 0, 1, 0], [], []>} : vector<8x8xf32>, vector<8x8xf32>, vector<8x8xf32> -> vector<8x8xf32>
    %cst_10 = arith.constant dense<0xFF800000> : vector<8xf32>
    %27 = vector.multi_reduction <maximumf>, %26, %cst_10 [1] : vector<8x8xf32> to vector<8xf32>
    %28 = vector.shape_cast %27 : vector<8xf32> to vector<8x1xf32>
    %29 = vector.broadcast %28 : vector<8x1xf32> to vector<8x8xf32>
    %30 = arith.subf %26, %29 : vector<8x8xf32>
    %31 = math.exp %30 : vector<8x8xf32>
    %cst_11 = arith.constant dense<0.000000e+00> : vector<8xf32>
    %32 = vector.multi_reduction <add>, %31, %cst_11 [1] : vector<8x8xf32> to vector<8xf32>
    %33 = vector.shape_cast %32 : vector<8xf32> to vector<8x1xf32>
    %34 = vector.broadcast %33 : vector<8x1xf32> to vector<8x8xf32>
    %35 = arith.divf %31, %34 : vector<8x8xf32>
    %cst_12 = arith.constant dense<0.000000e+00> : vector<8x8xf32>
    %36 = tpu.matmul %35, %25, %cst_12 {dimension_numbers = #tpu.dot_dimension_numbers<[1], [0], [0], [1], [0, 0, 1, 1], [], []>} : vector<8x8xf32>, vector<8x8xf32>, vector<8x8xf32> -> vector<8x8xf32>
    %37 = vector.extract_strided_slice %6 {offsets = [0, 16], sizes = [8, 8], strides = [1, 1]} : vector<8x32xf32> to vector<8x8xf32>
    %38 = vector.extract_strided_slice %7 {offsets = [0, 16], sizes = [8, 8], strides = [1, 1]} : vector<8x32xf32> to vector<8x8xf32>
    %39 = vector.extract_strided_slice %8 {offsets = [0, 16], sizes = [8, 8], strides = [1, 1]} : vector<8x32xf32> to vector<8x8xf32>
    %cst_13 = arith.constant dense<0.000000e+00> : vector<8x8xf32>
    %40 = tpu.matmul %37, %38, %cst_13 {dimension_numbers = #tpu.dot_dimension_numbers<[1], [1], [0], [0], [0, 0, 1, 0], [], []>} : vector<8x8xf32>, vector<8x8xf32>, vector<8x8xf32> -> vector<8x8xf32>
    %cst_14 = arith.constant dense<0xFF800000> : vector<8xf32>
    %41 = vector.multi_reduction <maximumf>, %40, %cst_14 [1] : vector<8x8xf32> to vector<8xf32>
    %42 = vector.shape_cast %41 : vector<8xf32> to vector<8x1xf32>
    %43 = vector.broadcast %42 : vector<8x1xf32> to vector<8x8xf32>
    %44 = arith.subf %40, %43 : vector<8x8xf32>
    %45 = math.exp %44 : vector<8x8xf32>
    %cst_15 = arith.constant dense<0.000000e+00> : vector<8xf32>
    %46 = vector.multi_reduction <add>, %45, %cst_15 [1] : vector<8x8xf32> to vector<8xf32>
    %47 = vector.shape_cast %46 : vector<8xf32> to vector<8x1xf32>
    %48 = vector.broadcast %47 : vector<8x1xf32> to vector<8x8xf32>
    %49 = arith.divf %45, %48 : vector<8x8xf32>
    %cst_16 = arith.constant dense<0.000000e+00> : vector<8x8xf32>
    %50 = tpu.matmul %49, %39, %cst_16 {dimension_numbers = #tpu.dot_dimension_numbers<[1], [0], [0], [1], [0, 0, 1, 1], [], []>} : vector<8x8xf32>, vector<8x8xf32>, vector<8x8xf32> -> vector<8x8xf32>
    %51 = vector.extract_strided_slice %6 {offsets = [0, 24], sizes = [8, 8], strides = [1, 1]} : vector<8x32xf32> to vector<8x8xf32>
    %52 = vector.extract_strided_slice %7 {offsets = [0, 24], sizes = [8, 8], strides = [1, 1]} : vector<8x32xf32> to vector<8x8xf32>
    %53 = vector.extract_strided_slice %8 {offsets = [0, 24], sizes = [8, 8], strides = [1, 1]} : vector<8x32xf32> to vector<8x8xf32>
    %cst_17 = arith.constant dense<0.000000e+00> : vector<8x8xf32>
    %54 = tpu.matmul %51, %52, %cst_17 {dimension_numbers = #tpu.dot_dimension_numbers<[1], [1], [0], [0], [0, 0, 1, 0], [], []>} : vector<8x8xf32>, vector<8x8xf32>, vector<8x8xf32> -> vector<8x8xf32>
    %cst_18 = arith.constant dense<0xFF800000> : vector<8xf32>
    %55 = vector.multi_reduction <maximumf>, %54, %cst_18 [1] : vector<8x8xf32> to vector<8xf32>
    %56 = vector.shape_cast %55 : vector<8xf32> to vector<8x1xf32>
    %57 = vector.broadcast %56 : vector<8x1xf32> to vector<8x8xf32>
    %58 = arith.subf %54, %57 : vector<8x8xf32>
    %59 = math.exp %58 : vector<8x8xf32>
    %cst_19 = arith.constant dense<0.000000e+00> : vector<8xf32>
    %60 = vector.multi_reduction <add>, %59, %cst_19 [1] : vector<8x8xf32> to vector<8xf32>
    %61 = vector.shape_cast %60 : vector<8xf32> to vector<8x1xf32>
    %62 = vector.broadcast %61 : vector<8x1xf32> to vector<8x8xf32>
    %63 = arith.divf %59, %62 : vector<8x8xf32>
    %cst_20 = arith.constant dense<0.000000e+00> : vector<8x8xf32>
    %64 = tpu.matmul %63, %53, %cst_20 {dimension_numbers = #tpu.dot_dimension_numbers<[1], [0], [0], [1], [0, 0, 1, 1], [], []>} : vector<8x8xf32>, vector<8x8xf32>, vector<8x8xf32> -> vector<8x8xf32>
    %65 = tpu.concatenate %22, %36, %50, %64 in 1 : vector<8x8xf32>, vector<8x8xf32>, vector<8x8xf32>, vector<8x8xf32> -> vector<8x32xf32>
    %c0_21 = arith.constant 0 : index
    %c0_22 = arith.constant 0 : index
    %66 = vector.load %arg3[%c0_21, %c0_22] : memref<32x32xf32, #tpu.memory_space<vmem>>, vector<32x32xf32>
    %cst_23 = arith.constant dense<0.000000e+00> : vector<8x32xf32>
    %67 = tpu.matmul %65, %66, %cst_23 {dimension_numbers = #tpu.dot_dimension_numbers<[1], [0], [0], [1], [0, 0, 1, 1], [], []>} : vector<8x32xf32>, vector<32x32xf32>, vector<8x32xf32> -> vector<8x32xf32>
    %c0_24 = arith.constant 0 : index
    %c0_25 = arith.constant 0 : index
    %68 = vector.load %arg4[%c0_24, %c0_25] : memref<1x32xf32, #tpu.memory_space<vmem>>, vector<1x32xf32>
    %69 = vector.broadcast %68 : vector<1x32xf32> to vector<8x32xf32>
    %70 = arith.addf %67, %69 : vector<8x32xf32>
    %c0_26 = arith.constant 0 : index
    %c0_27 = arith.constant 0 : index
    %c0_28 = arith.constant 0 : index
    %71 = vector.load %arg5[%c0_26, %c0_27, %c0_28] : memref<1x8x32xf32, #tpu.memory_space<vmem>>, vector<1x8x32xf32>
    %72 = vector.shape_cast %71 : vector<1x8x32xf32> to vector<8x32xf32>
    %73 = vector.shape_cast %70 : vector<8x32xf32> to vector<1x8x32xf32>
    tpu.vector_store %arg5[%c0_26, %c0_27, %c0_28], %73 {strides = array<i32>} : memref<1x8x32xf32, #tpu.memory_space<vmem>>, vector<1x8x32xf32>,
    return
  }
  func.func @transform_0(%arg0: i32) -> (i32, i32, i32) {
    %c0_i32 = arith.constant 0 : i32
    %c0_i32_0 = arith.constant 0 : i32
    %c0_i32_1 = arith.constant 0 : i32
    return %arg0, %c0_i32, %c0_i32_0 : i32, i32, i32
  }
  func.func @transform_1(%arg0: i32) -> (i32, i32) {
    %c0_i32 = arith.constant 0 : i32
    %c0_i32_0 = arith.constant 0 : i32
    %c0_i32_1 = arith.constant 0 : i32
    return %c0_i32, %c0_i32_0 : i32, i32
  }
  func.func @transform_2(%arg0: i32) -> (i32, i32) {
    %c0_i32 = arith.constant 0 : i32
    %c0_i32_0 = arith.constant 0 : i32
    %c0_i32_1 = arith.constant 0 : i32
    return %c0_i32, %c0_i32_0 : i32, i32
  }
  func.func @transform_3(%arg0: i32) -> (i32, i32) {
    %c0_i32 = arith.constant 0 : i32
    %c0_i32_0 = arith.constant 0 : i32
    %c0_i32_1 = arith.constant 0 : i32
    return %c0_i32, %c0_i32_0 : i32, i32
  }
  func.func @transform_4(%arg0: i32) -> (i32, i32, i32) {
    %c0_i32 = arith.constant 0 : i32
    %c0_i32_0 = arith.constant 0 : i32
    %c0_i32_1 = arith.constant 0 : i32
    return %arg0, %c0_i32, %c0_i32_0 : i32, i32, i32
  }
}

</mosaic_0001>

<bundles_post_ra>
// kernel: tpu_custom_call.1
= control target key start
LH: loop header
LB: loop body
LE: loop exit
PB: predicated region body
PF: predicated region fallthrough
CT: control target
= control target key end

     0   :  { %9 = vsyncpa [#allocation3], 0  ;;  %s1857_s0 = inlined_call_operand.hbm [shape: f32[2,8,32], index: 0, kind: input, shape index: {}]   ;;  %s1858_s1 = inlined_call_operand.hbm [shape: f32[32,96], index: 1, kind: input, shape index: {}]   ;;  %s1859_s2 = inlined_call_operand.hbm [shape: f32[32,32], index: 2, kind: input, shape index: {}]   ;;  %s1860_s3 = inlined_call_operand.vmem [shape: f32[1,32], index: 3, kind: input, shape index: {}]   ;;  %s1861_s4 = inlined_call_operand.hbm [shape: f32[2,8,32], index: 4, kind: output, shape index: {}]  }
   0x1   :  { %11 = vsyncpa [#allocation3 + $0x1], 0 }
   0x2   :  { %12 = vsyncpa [#allocation6], 0 }
   0x3   :  { %13 = vsyncpa [#allocation4], 0 }
   0x4   :  { %15 = vsyncpa [#allocation4 + $0x1], 0  ;;  %s1605_s15 = smov 0   ;;  %s1607_s16 = smov 0  }
   0x5   :  { %s1609_s17 = smov 0   ;;  %s1611_s18 = smov 0  }
   0x6 LB: > { %s1626_s19 = sadd.s32 4294967295, %s1556_s18   ;;  %s1188_s20 = sadd.s32 4294967294, %s1556_s18   ;;  %s1556_s18 = sphi %s1611_s18, %s1883_s18   ;;  %s1552_s17 = sphi %s1609_s17, %s1882_s17   ;;  %s1548_s16 = sphi %s1607_s16, %s1881_s16   ;;  %s1544_s15 = sphi %s1605_s15, %s1880_s15  }
   0x7   : > { %p41_p0 = scmp.ne.s32.totalorder %s1548_s16, %s1544_s15  ;;  %p1862_p1 = scmp.eq.s32.totalorder %s1626_s19, 0 }
   0x8   : > { %p134_p3 = scmp.eq.s32.totalorder %s1188_s20, 1  ;;  %p1189_p5 = scmp.ge.s32.totalorder %s1556_s18, 1 }
   0x9   : > { %p1635_p4 = por %p1862_p1, %p41_p0  ;;  %p141_p7 = scmp.lt.s32.totalorder %s1556_s18, 3 }
   0xa   : > { %p1640_p6 = por %p134_p3, %p41_p0  ;;  %s1558_s24 = smov [#allocation5]  }
   0xb   : > { %s1866_s21 = scalar_select %p1635_p4, 1, 0 }
   0xc   : > { %s1867_s22 = scalar_select %p1640_p6, 1, 0 }
   0xd   : > { %p1645_p8 = pnand %p1189_p5, %p141_p7  ;;  %s153_s25 = sshll.u32 %s1558_s24, 4  ;;  %s154_s25 = int_to_ptr.vmem [resolvable:$true] %s153_s25 }
   0xe   : > { %s1559_s27 = smov [#allocation7]   ;;  %s1419_s29 = scalar_lea.vmem %s154_s25, 512 }
   0xf   : > { %s1868_s23 = scalar_select %p1645_p8, 1, 0 }
  0x10   : > { %p1319_p9 = pneg %p1645_p8  ;;  %s166_s28 = sshll.u32 %s1559_s27, 4  ;;  %s167_s28 = int_to_ptr.vmem [resolvable:$true] %s166_s28 }
  0x11   : > { %p1420_p13 = scmp.ne.s32.totalorder %s154_s25, %s1419_s29  ;;  %p1427_p5 = scmp.lt.s32.totalorder %s154_s25, %s154_s25 }
  0x12   : > { %p1654_p11 = pnand %p1319_p9, %p1862_p1  ;;  %p1428_p7 = scmp.lt.s32.totalorder %s1419_s29, %s1419_s29 }
  0x14   : > { %p1410_p12 = pneg %p1654_p11  ;;  %p1429_p10 = por %p1428_p7, %p1427_p5 }
  0x16   : > { %p1422_p0 = pnand %p1420_p13, %p1410_p12 }
  0x18   : > { %p1423_p3 = pneg %p1422_p0 }
  0x1a   : > { %p1430_p9 = pnand %p1429_p10, %p1423_p3 }
  0x1c   : > { %1433 = shalt.err (!%p1430_p9)
}
  0x1d   : > { %s1560_s30 = smov 128   ;;  %s1561_s5 = smov 8  }
  0x1e   : > { %1322 = dma.hbm_to_vmem [thread:$0]  (!%p1654_p11), %s1858_s1, 512, %s154_s25, [#allocation6], %s1560_s30, %s1560_s30, %s1561_s5  }
  0x1f   : > { %s1445_s8 = scalar_lea.vmem %s167_s28, 512  ;;  %p1453_p2 = scmp.lt.s32.totalorder %s167_s28, %s167_s28 }
  0x20   : > { %p1446_p1 = scmp.ne.s32.totalorder %s167_s28, %s1445_s8  ;;  %p1454_p6 = scmp.lt.s32.totalorder %s1445_s8, %s1445_s8 }
  0x22   : > { %p1448_p13 = pnand %p1446_p1, %p1410_p12  ;;  %p1455_p5 = por %p1454_p6, %p1453_p2 }
  0x24   : > { %p1449_p0 = pneg %p1448_p13 }
  0x26   : > { %p1456_p10 = pnand %p1455_p5, %p1449_p0 }
  0x28   : > { %1459 = shalt.err (!%p1456_p10)
}
  0x29   : > { %1325 = dma.hbm_to_vmem [thread:$0]  (!%p1654_p11), %s1859_s2, 512, %s167_s28, [#allocation6], %s1560_s30, %s1560_s30, %s1561_s5  }
  0x2a   : > { %s1677_s11 = sadd.s32 1, %s1556_s18   ;;  %s28_s12 = sadd.s32 1, %s1552_s17 }
  0x2b   : > { %s25_s13 = ssub.s32 %s1556_s18, %s1677_s11  ;;  %p35_p1 = scmp.ne.s32.totalorder %s1552_s17, %s1548_s16 }
  0x2c   : > { %p26_p2 = scmp.eq.s32.totalorder %s25_s13, 0  ;;  %p36_p6 = scmp.eq.s32.totalorder %s1556_s18, 0 }
  0x2d   : > { %p1870_p12 = scmp.eq.s32.totalorder %s1626_s19, 1  ;;  %p1336_p7 = scmp.lt.s32.totalorder %s1556_s18, 2 }
  0x2e   : > { %s1693_s20 = scalar_select %p26_p2, %s1552_s17, %s28_s12  }
  0x2f   : > { %p1687_p3 = por %p1870_p12, %p35_p1  ;;  %p37_p9 = por %p36_p6, %p35_p1 }
  0x30   : > { %s183_s24 = sand.u32 1, %s1552_s17   ;;  %s1194_s26 = sshll.u32 %s1556_s18, 7 }
  0x31   : > { %s1871_s14 = scalar_select %p1687_p3, 1, 0 }
  0x32   : > { %s1193_s25 = sshll.u32 %s183_s24, 3  ;;  %s1700_s29 = scalar_lea.hbm %s1857_s0, %s1194_s26 }
  0x33   : > { %s187_s30 = scalar_lea.vmem [#allocation2], %s1193_s25  ;;  %p1702_p11 = pnand %p1336_p7, %p37_p9 }
  0x34   : > { %s194_s5 = sshll.u32 %s187_s30, 4  ;;  %s184_s7 = scalar_lea.sflag [#allocation3], %s183_s24  ;;  %s195_s5 = int_to_ptr.vmem [resolvable:$true] %s194_s5 }
  0x35   : > { %s1460_s8 = scalar_lea.hbm %s1700_s29, 128  ;;  %p1462_p0 = pneg %p1702_p11 }
  0x36   : > { %p1461_p13 = scmp.ne.s32.totalorder %s1700_s29, %s1460_s8  ;;  %s1465_s12 = scalar_lea.hbm %s1857_s0, 256 }
  0x37   : > { %p1466_p1 = scmp.lt.s32.totalorder %s1700_s29, %s1857_s0  ;;  %p1467_p2 = scmp.lt.s32.totalorder %s1465_s12, %s1460_s8 }
  0x38   : > { %p1463_p5 = pnand %p1462_p0, %p1461_p13 }
  0x39   : > { %p1468_p6 = por %p1467_p2, %p1466_p1 }
  0x3a   : > { %p1464_p10 = pneg %p1463_p5 }
  0x3c   : > { %p1469_p12 = pnand %p1468_p6, %p1464_p10 }
  0x3e   : > { %1472 = shalt.err (!%p1469_p12)
}
  0x3f   : > { %s1473_s26 = scalar_lea.vmem %s195_s5, 128  ;;  %s1562_s24 = smov [#allocation2]  }
  0x40   : > { %p1474_p7 = scmp.ne.s32.totalorder %s195_s5, %s1473_s26  ;;  %s1478_s27 = sshll.u32 %s1562_s24, 4  ;;  %s1479_s27 = int_to_ptr.vmem [resolvable:$false] %s1478_s27 }
  0x41   : > { %s1480_s28 = scalar_lea.vmem %s1479_s27, 256  ;;  %p1481_p13 = scmp.lt.s32.totalorder %s195_s5, %s1479_s27 }
  0x42   : > { %p1476_p9 = pnand %p1474_p7, %p1462_p0  ;;  %p1482_p5 = scmp.lt.s32.totalorder %s1480_s28, %s1473_s26 }
  0x44   : > { %p1477_p3 = pneg %p1476_p9  ;;  %p1483_p4 = por %p1482_p5, %p1481_p13 }
  0x46   : > { %p1484_p8 = pnand %p1483_p4, %p1477_p3 }
  0x48   : > { %1487 = shalt.err (!%p1484_p8)
}
  0x49   : > { %1329 = dma.hbm_to_vmem [thread:$0]  (!%p1702_p11), %s1700_s29, 128, %s195_s5, %s184_s7  }
  0x4a   : > { %p1873_p10 = scmp.ne.s32.totalorder %s1868_s23, 0 }
  0x4b   : > { %s1723_s30 = sand.u32 (!%p1873_p10), 1, %s1548_s16   ;;  %p1874_p4 = scmp.ne.s32.totalorder (!%p1873_p10), %s1866_s21, 0 }
  0x4c   : > { %203 = sbr.rel (%p1873_p10) target bundleno = 1982 (0x7be), region = 36  ;;  %s1196_s8 = sshll.u32 (!%p1873_p10), %s1723_s30, 3 }
  0x4d   : > { %s206_s9 = scalar_lea.sflag (!%p1873_p10), [#allocation3], %s1723_s30  ;;  %s209_s10 = scalar_lea.vmem (!%p1873_p10), [#allocation2], %s1196_s8 }
  0x51   : > { %1531 = dma.done.wait (%p1874_p4), %s206_s9, 128  }
  0x52   : > { %1533 = vsyncadd (%p1874_p4), %s206_s9, 4294967168  ;;  %p1875_p8 = scmp.eq.s32.totalorder %s1626_s19, 0 }
  0x54   : > { %1535 = dma.done.wait (%p1875_p8), [#allocation6], 1024   ;;  %p1876_p3 = pmov %p1875_p8 }
  0x55   : > { %v1563_v0 = vmov 0.0   ;;  %vm1564_vm0 = vmmov 0   ;;  %v246_v1 = vld [vmem:[#allocation5 + $0x18] sm:$0xff]  ;;  %v245_v2 = vld [vmem:[#allocation5 + $0x10] sm:$0xff]  ;;  %v244_v3 = vld [vmem:[#allocation5 + $0x8] sm:$0xff]  ;;  %vm247_vm1 = vcmask 261120  }
  0x56   : > { %1537 = vsyncadd (%p1876_p3), [#allocation6], 4294966272  ;;  %1245 = vmatprep.subr.mxu0 %v1563_v0  ;;  %1253 = vmatprep.mubr.msk.f32.mxu0 %vm1564_vm0, %v1563_v0  ;;  %v243_v4 = vld [vmem:[#allocation5] sm:$0xff]  ;;  %v242_v5 = vld [vmem:[%s209_s10] sm:$0xff]  ;;  %s1565_s21 = smov 64   ;;  %s1566_s23 = smov 96  }
  0x57   : > { %1256 = vmatprep.subr.mxu1 %v1563_v0  ;;  %1258 = vmatprep.mubr.msk.f32.mxu1 %vm1564_vm0, %v1563_v0  ;;  %s1567_s29 = smov 88   ;;  %s1568_s5 = smov 120   ;;  %vm325_vm2 = vcmask 64512   ;;  %vm996_vm3 = vcmask 130048   ;;  %vm998_vm4 = vcmask 195584  }
  0x58   : > { %1246 = vmatpush3.msra.mxu0 %v246_v1  ;;  %s1569_s6 = smov 80   ;;  %s1570_s7 = smov 72  }
  0x59   : > { %1247 = vmatprep.subr.mxu0 %v1563_v0  ;;  %s1571_s12 = smov 112   ;;  %s1572_s13 = smov 104  }
  0x5a   : > { %1248 = vmatpush3.msra.mxu0 %v245_v2  ;;  %s1573_s25 = smov 56   ;;  %s1574_s26 = smov 48  }
  0x5b   : > { %1249 = vmatprep.subr.mxu0 %v1563_v0  ;;  %s1575_s24 = smov 40   ;;  %s1576_s27 = smov 8  }
  0x5c   : > { %1250 = vmatpush3.msra.mxu0 %v244_v3  ;;  %v1003_v3 = vld [vmem:[#allocation7 + $0x18] sm:$0xff]  ;;  %s1577_s28 = smov 16   ;;  %s1578_s9 = smov 24  }
  0x5d   : > { %1251 = vmatprep.subr.mxu0 %v1563_v0  ;;  %p1877_p0 = scmp.ne.s32.totalorder %s1871_s14, 0 }
  0x5e   : > { %1252 = vmatpush3.msra.mxu0 %v243_v4  ;;  %v1002_v4 = vld [vmem:[#allocation7 + $0x10] sm:$0xff] }
  0x5f   : > { %1254 = vmatmul.mubr.msk.f32.vlgmr.msra.gmra.mxu0 %vm247_vm1, %v242_v5  ;;  %1276 = vmatprep.subr.mxu0 %v1563_v0  ;;  %v1001_v5 = vld [vmem:[#allocation7 + $0x8] sm:$0xff] }
  0x60   : > { %1278 = vmatprep.mubr.msk.f32.mxu0 %vm1564_vm0, %v1563_v0 }
 0x11f   : > { %v1750_v6 = vpop.f32.mrf.mxu0 }
 0x120   : > { %412 = vrot.lane.b32.xlu1 %v1750_v6, %s1565_s21  ;;  %323 = vrot.lane.b32.xlu0 %v1750_v6, %s1566_s23  ;;  %v321_v8 = vmul.f32 0.35355338, %v1750_v6  ;;  %s1216_s23 = sshll.u32 %s1626_s19, 7  ;;  %s1579_s19 = smov [#allocation8]  }
 0x121   : > { %v1255_v7 = vpop.f32.mrf.mxu0 }
 0x124   : > { %490 = vrot.lane.b32.xlu1 %v1750_v6, %s1567_s29  ;;  %s241_s29 = scalar_lea.vmem [#allocation8], %s1196_s8  ;;  %s1492_s8 = sshll.u32 %s1579_s19, 4  ;;  %s1493_s8 = int_to_ptr.vmem [resolvable:$false] %s1492_s8 }
 0x128   : > { %488 = vrot.lane.b32.xlu1 %v321_v8, %s1568_s5  ;;  %s1099_s5 = sshll.u32 %s241_s29, 4  ;;  %s1100_s5 = int_to_ptr.vmem [resolvable:$true] %s1099_s5 }
 0x129   : > { %p1495_p6 = scmp.lt.s32.totalorder %s1100_s5, %s1493_s8 }
 0x12c   : > { %655 = vrot.lane.b32.xlu1 %v1750_v6, %s1569_s6 }
 0x192   : > { %v413_v9 = vpop.permute.xlu1 %412  ;;  %v324_v10 = vpop.permute.xlu0 %323 }
 0x193   : > { %1257 = vmatpush3.xpose.msk.msra.mxu1 %vm325_vm2, %v324_v10 }
 0x194   : > { %1261 = vmatprep.subr.mxu1 %v1563_v0 }
 0x196   : > { %v491_v11 = vpop.permute.xlu1 %490  ;;  %1259 = vmatmul.mubr.msk.f32.vlgmr.msra.gmra.mxu1 %vm325_vm2, %v321_v8 }
 0x197   : > { %1262 = vmatpush3.msra.mxu1 %v413_v9  ;;  %1263 = vmatprep.mubr.msk.f32.mxu1 %vm1564_vm0, %v1563_v0 }
 0x198   : > { %1266 = vmatprep.subr.mxu1 %v1563_v0 }
 0x19a   : > { %v489_v12 = vpop.permute.xlu1 %488 }
 0x19e   : > { %v656_v13 = vpop.permute.xlu1 %655 }
 0x19f   : > { %1277 = vmatpush3.xpose.msk.msra.mxu0 %vm325_vm2, %v656_v13 }
 0x1a0   : > { %1286 = vmatprep.subr.mxu0 %v1563_v0 }
 0x256   : > { %v397_v14 = vpop.f32.mrf.mxu1 }
 0x257   : > { %v401_v15 = vsel %vm325_vm2, %v397_v14, -inf }
 0x258   : > { %402 = vmax.xlane.f32.xlu0 %v401_v15  ;;  %v1260_v16 = vpop.f32.mrf.mxu1 }
 0x26e   : > { %820 = vrot.lane.b32.xlu0 %v1750_v6, %s1570_s7 }
 0x2e1   : > { %v403_v17 = vpop.xlane.xlu0 %402 }
 0x2e2   : > { %v404_v18 = vsub.f32 %v397_v14, %v403_v17 }
 0x2e4   : > { %v405_v19 = vmul.f32 1.442695, %v404_v18  ;;  %v1213_v18 = vld [vmem:[%s1860_s3] ss:$0 sm:$0xff] }
 0x2e5   : > { %v821_v24 = vpop.permute.xlu0 %820 }
 0x2e6   : > { %1392 = vpow2.f32 %v405_v19 }
 0x2f3   : > { %v1393_v20 = vpop.eup %1392 }
 0x2f4   : > { %v407_v21 = vsel %vm325_vm2, %v1393_v20, 0.0 }
 0x2f5   : > { %408 = vadd.xlane.f32.xlu1 %v407_v21 }
 0x306   : > { %653 = vrot.lane.b32.xlu1 %v321_v8, %s1571_s12  ;;  %s1819_s12 = scalar_lea.hbm %s1861_s4, %s1216_s23 }
 0x30a   : > { %818 = vrot.lane.b32.xlu1 %v321_v8, %s1572_s13  ;;  %s1086_s13 = scalar_lea.sflag [#allocation4], %s1723_s30 }
 0x37e   : > { %v409_v22 = vpop.xlane.xlu1 %408 }
 0x37f   : > { %1394 = vrcp.f32 %v409_v22 }
 0x382   : > { %v654_v23 = vpop.permute.xlu1 %653 }
 0x383   : > { %1279 = vmatmul.mubr.msk.f32.vlgmr.msra.gmra.mxu0 %vm325_vm2, %v654_v23 }
 0x384   : > { %1287 = vmatpush3.xpose.msk.msra.mxu0 %vm325_vm2, %v821_v24  ;;  %1288 = vmatprep.mubr.msk.f32.mxu0 %vm1564_vm0, %v1563_v0 }
 0x385   : > { %1296 = vmatprep.subr.mxu0 %v1563_v0 }
 0x386   : > { %v819_v25 = vpop.permute.xlu1 %818 }
 0x387   : > { %1289 = vmatmul.mubr.msk.f32.vlgmr.msra.gmra.mxu0 %vm325_vm2, %v819_v25 }
 0x388   : > { %1304 = vmatprep.mubr.msk.f32.mxu0 %vm1564_vm0, %v1563_v0  ;;  %1297 = vmatpush3.msra.mxu0 %v1003_v3 }
 0x389   : > { %1298 = vmatprep.subr.mxu0 %v1563_v0 }
 0x38a   : > { %1299 = vmatpush3.msra.mxu0 %v1002_v4 }
 0x38b   : > { %1300 = vmatprep.subr.mxu0 %v1563_v0 }
 0x38c   : > { %v1395_v26 = vpop.eup %1394  ;;  %1301 = vmatpush3.msra.mxu0 %v1001_v5 }
 0x38d   : > { %v411_v27 = vmul.f32 %v1395_v26, %v1393_v20  ;;  %1302 = vmatprep.subr.mxu0 %v1563_v0 }
 0x38f   : > { %1264 = vmatmul.mubr.msk.f32.vlgmr.msra.gmra.mxu1 %vm325_vm2, %v411_v27 }
 0x390   : > { %1267 = vmatpush3.xpose.msk.msra.mxu1 %vm325_vm2, %v491_v11  ;;  %1268 = vmatprep.mubr.msk.f32.mxu1 %vm1564_vm0, %v1563_v0 }
 0x391   : > { %1271 = vmatprep.subr.mxu1 %v1563_v0 }
 0x393   : > { %1269 = vmatmul.mubr.msk.f32.vlgmr.msra.gmra.mxu1 %vm325_vm2, %v489_v12 }
 0x394   : > { %1273 = vmatprep.mubr.msk.f32.mxu1 %vm1564_vm0, %v1563_v0 }
 0x443   : > { %v727_v28 = vpop.f32.mrf.mxu0 }
 0x444   : > { %v731_v29 = vsel %vm325_vm2, %v727_v28, -inf }
 0x445   : > { %732 = vmax.xlane.f32.xlu0 %v731_v29  ;;  %v1280_v30 = vpop.f32.mrf.mxu0 }
 0x447   : > { %v892_v31 = vpop.f32.mrf.mxu0 }
 0x448   : > { %v896_v38 = vsel %vm325_vm2, %v892_v31, -inf }
 0x449   : > { %v1290_v32 = vpop.f32.mrf.mxu0 }
 0x44f   : > { %v1785_v33 = vpop.f32.mrf.mxu1 }
 0x451   : > { %v1265_v34 = vpop.f32.mrf.mxu1 }
 0x453   : > { %v562_v35 = vpop.f32.mrf.mxu1 }
 0x454   : > { %v566_v36 = vsel %vm325_vm2, %v562_v35, -inf }
 0x455   : > { %567 = vmax.xlane.f32.xlu1 %v566_v36  ;;  %v1270_v37 = vpop.f32.mrf.mxu1 }
 0x459   : > { %897 = vmax.xlane.f32.xlu1 %v896_v38 }
 0x4ce   : > { %v733_v39 = vpop.xlane.xlu0 %732 }
 0x4cf   : > { %v734_v40 = vsub.f32 %v727_v28, %v733_v39 }
 0x4d1   : > { %v735_v41 = vmul.f32 1.442695, %v734_v40 }
 0x4d3   : > { %1396 = vpow2.f32 %v735_v41 }
 0x4de   : > { %v568_v42 = vpop.xlane.xlu1 %567 }
 0x4df   : > { %v569_v50 = vsub.f32 %v562_v35, %v568_v42 }
 0x4e0   : > { %v1397_v43 = vpop.eup %1396 }
 0x4e1   : > { %v737_v44 = vsel %vm325_vm2, %v1397_v43, 0.0  ;;  %v570_v51 = vmul.f32 1.442695, %v569_v50 }
 0x4e2   : > { %738 = vadd.xlane.f32.xlu1 %v737_v44  ;;  %v898_v45 = vpop.xlane.xlu1 %897 }
 0x4e3   : > { %v899_v46 = vsub.f32 %v892_v31, %v898_v45 }
 0x4e5   : > { %v900_v47 = vmul.f32 1.442695, %v899_v46 }
 0x4e7   : > { %1398 = vpow2.f32 %v900_v47 }
 0x4e8   : > { %1400 = vpow2.f32 %v570_v51 }
 0x4f3   : > { %577 = vrot.lane.b32.xlu1 %v1750_v6, %s1573_s25  ;;  %s1488_s25 = scalar_lea.vmem %s1100_s5, 128 }
 0x4f4   : > { %v1399_v48 = vpop.eup %1398  ;;  %p1489_p11 = scmp.ne.s32.totalorder %s1100_s5, %s1488_s25 }
 0x4f5   : > { %v902_v49 = vsel %vm325_vm2, %v1399_v48, 0.0  ;;  %v1401_v52 = vpop.eup %1400 }
 0x4f6   : > { %903 = vadd.xlane.f32.xlu0 %v902_v49  ;;  %v572_v53 = vsel %vm325_vm2, %v1401_v52, 0.0  ;;  %p1490_p1 = pnand %p1489_p11, %p1877_p0 }
 0x4f8   : > { %p1491_p2 = pneg %p1490_p1 }
 0x50c   : > { %742 = vrot.lane.b32.xlu0 %v1750_v6, %s1574_s26  ;;  %s1494_s26 = scalar_lea.vmem %s1493_s8, 256 }
 0x50d   : > { %p1496_p12 = scmp.lt.s32.totalorder %s1494_s26, %s1488_s25 }
 0x50f   : > { %p1497_p7 = por %p1496_p12, %p1495_p6 }
 0x511   : > { %p1498_p9 = pnand %p1497_p7, %p1491_p2 }
 0x517   : > { %573 = vadd.xlane.f32.xlu1 %v572_v53 }
 0x528   : > { %907 = vrot.lane.b32.xlu1 %v1750_v6, %s1575_s24  ;;  %v1000_v6 = vld [vmem:[#allocation7] sm:$0xff] }
 0x529   : > { %1303 = vmatpush3.msra.mxu0 %v1000_v6 }
 0x56b   : > { %v739_v54 = vpop.xlane.xlu1 %738 }
 0x56f   : > { %v578_v55 = vpop.permute.xlu1 %577 }
 0x570   : > { %1272 = vmatpush3.msra.mxu1 %v578_v55 }
 0x571   : > { %1281 = vmatprep.subr.mxu1 %v1563_v0 }
 0x57f   : > { %v904_v57 = vpop.xlane.xlu0 %903 }
 0x583   : > { %v743_v61 = vpop.permute.xlu0 %742 }
 0x5a0   : > { %v574_v56 = vpop.xlane.xlu1 %573 }
 0x5a1   : > { %1402 = vrcp.f32 %v574_v56 }
 0x5a2   : > { %1404 = vrcp.f32 %v739_v54 }
 0x5a3   : > { %1406 = vrcp.f32 %v904_v57 }
 0x5a4   : > { %v908_v1 = vpop.permute.xlu1 %907 }
 0x5ae   : > { %v1403_v58 = vpop.eup %1402 }
 0x5af   : > { %v576_v59 = vmul.f32 %v1403_v58, %v1401_v52  ;;  %v1405_v60 = vpop.eup %1404 }
 0x5b0   : > { %v741_v62 = vmul.f32 %v1405_v60, %v1397_v43  ;;  %v1407_v63 = vpop.eup %1406 }
 0x5b1   : > { %1274 = vmatmul.mubr.msk.f32.vlgmr.msra.gmra.mxu1 %vm325_vm2, %v576_v59  ;;  %v906_v2 = vmul.f32 %v1407_v63, %v1399_v48 }
 0x5b2   : > { %1282 = vmatpush3.msra.mxu1 %v743_v61  ;;  %1283 = vmatprep.mubr.msk.f32.mxu1 %vm1564_vm0, %v1563_v0 }
 0x5b3   : > { %1291 = vmatprep.subr.mxu1 %v1563_v0 }
 0x5b5   : > { %1284 = vmatmul.mubr.msk.f32.vlgmr.msra.gmra.mxu1 %vm325_vm2, %v741_v62 }
 0x5b6   : > { %1292 = vmatpush3.msra.mxu1 %v908_v1  ;;  %1293 = vmatprep.mubr.msk.f32.mxu1 %vm1564_vm0, %v1563_v0 }
 0x5b9   : > { %1294 = vmatmul.mubr.msk.f32.vlgmr.msra.gmra.mxu1 %vm325_vm2, %v906_v2 }
 0x671   : > { %v649_v7 = vpop.f32.mrf.mxu1 }
 0x672   : > { %984 = vrot.lane.b32.xlu1 %v649_v7, %s1576_s27 }
 0x673   : > { %v1275_v8 = vpop.f32.mrf.mxu1 }
 0x675   : > { %v814_v9 = vpop.f32.mrf.mxu1 }
 0x676   : > { %988 = vrot.lane.b32.xlu0 %v814_v9, %s1577_s28 }
 0x677   : > { %v1285_v10 = vpop.f32.mrf.mxu1 }
 0x679   : > { %v979_v11 = vpop.f32.mrf.mxu1 }
 0x67a   : > { %992 = vrot.lane.b32.xlu1 %v979_v11, %s1578_s9 }
 0x67b   : > { %v1295_v12 = vpop.f32.mrf.mxu1 }
 0x6e4   : > { %v985_v13 = vpop.permute.xlu1 %984 }
 0x6e5   : > { %v995_v0 = vsel %vm325_vm2, %v1785_v33, %v985_v13 }
 0x6e8   : > { %v989_v14 = vpop.permute.xlu0 %988 }
 0x6e9   : > { %v997_v15 = vsel %vm996_vm3, %v995_v0, %v989_v14 }
 0x6ec   : > { %v993_v16 = vpop.permute.xlu1 %992 }
 0x6ed   : > { %v999_v17 = vsel %vm998_vm4, %v997_v15, %v993_v16 }
 0x6ee   : > { %1305 = vmatmul.mubr.msk.f32.vlgmr.msra.gmra.mxu0 %vm247_vm1, %v999_v17 }
 0x7ae   : > { %v1080_v19 = vpop.f32.mrf.mxu0 }
 0x7af   : > { %v1081_v20 = vadd.f32 %v1213_v18, %v1080_v19 }
 0x7b0   : > { %v1306_v21 = vpop.f32.mrf.mxu0 }
 0x7b1   : > { %1084 = vst.msk [vmem:[%s241_s29] sm:$0xff] %vm247_vm1, %v1081_v20 }
 0x7b2   : > { %1501 = shalt.err (!%p1498_p9)
}
 0x7b3   : > { %s1502_s24 = scalar_lea.hbm %s1819_s12, 128  ;;  %s1506_s28 = scalar_lea.hbm %s1861_s4, 256 }
 0x7b4   : > { %p1503_p13 = scmp.ne.s32.totalorder %s1819_s12, %s1502_s24  ;;  %p1507_p4 = scmp.lt.s32.totalorder %s1819_s12, %s1861_s4 }
 0x7b5   : > { %p1508_p8 = scmp.lt.s32.totalorder %s1506_s28, %s1502_s24 }
 0x7b6   : > { %p1504_p5 = pnand %p1503_p13, %p1877_p0 }
 0x7b7   : > { %p1509_p3 = por %p1508_p8, %p1507_p4 }
 0x7b8   : > { %p1505_p10 = pneg %p1504_p5 }
 0x7ba   : > { %p1510_p11 = pnand %p1509_p3, %p1505_p10 }
 0x7bc   : > { %1513 = shalt.err (!%p1510_p11)
}
 0x7bd   : > { %1317 = dma.vmem_to_hbm [thread:$0]  (%p1877_p0), %s1100_s5, 128, %s1819_s12, %s1086_s13  }
 0x7be PF: > { %s1111_s21 = sand.u32 1, %s1544_s15   ;;  %p1878_p1 = scmp.ne.s32.totalorder %s1867_s22, 0 }
 0x7bf   : > { %p1879_p2 = scmp.ge.s32.totalorder %s1556_s18, 2  ;;  %s1112_s23 = scalar_lea.sflag [#allocation4], %s1111_s21 }
 0x7c1   : > { %p1331_p6 = pnand %p1879_p2, %p1878_p1 }
 0x7c3   : > { %p1332_p12 = pneg %p1331_p6 }
 0x7c5   : > { %1539 = dma.done.wait (%p1332_p12), %s1112_s23, 128  }
 0x7c6   : > { %1541 = vsyncadd (%p1332_p12), %s1112_s23, 4294967168  ;;  %p18_p7 = scmp.ge.s32.totalorder %s1677_s11, 4   ;;  %s1880_s15 = smov %s1548_s16 }
 0x7c7   : > { %s1881_s16 = smov %s1552_s17  ;;  %s1882_s17 = smov %s1693_s20 }
 0x7c8   : > { %s1883_s18 = smov %s1677_s11  ;;  %20 = sbr.rel (!%p18_p7) target bundleno = 6 (0x6), region = 89 }
 0x7cd   :  { %1117 = vsyncpa [#allocation3], 1 }
 0x7ce   :  { %1119 = vsyncpa [#allocation3 + $0x1], 1 }
 0x7cf   :  { %1120 = vsyncpa [#allocation6], 1 }
 0x7d0   :  { %1121 = vsyncpa [#allocation4], 1 }
 0x7d1   :  { %1123 = vsyncpa [#allocation4 + $0x1], 1 }

</bundles_post_ra>
